<compile_context>
chip_gen: v7x
topology: tpu7x:2x2x1
jax: 0.10.0
libtpu: 0.0.40
codegen_flags: <defaults>
</compile_context>

<pallas_src>
import math

import jax
import jax.numpy as jnp
from jax import lax
from jax.experimental import pallas as pl
from jax.experimental.pallas import tpu as pltpu


# ----------------------------------------------------------------------------------
# Kernels
# ----------------------------------------------------------------------------------
def _text_embed_kernel(txt_ref, wtxt_ref, out_ref):
    """Project + L2-normalize all text features once (small, single block)."""
    emb = jnp.dot(txt_ref[...], wtxt_ref[...],
                  preferred_element_type=jnp.float32)              # (n_pad, E_pad) f32
    inv = lax.rsqrt(jnp.sum(emb * emb, axis=-1, keepdims=True) + 1e-12)
    out_ref[...] = (emb * inv).astype(jnp.bfloat16)                # normalized, bf16


def _img_score_kernel(img_ref, wimg_ref, txtn_ref, out_ref, acc_ref):
    """Grid = (m_tiles, k_tiles). Accumulate image projection over K, then score."""
    k = pl.program_id(1)

    @pl.when(k == 0)
    def _():
        acc_ref[...] = jnp.zeros_like(acc_ref)

    # bf16 MXU matmul, f32 accumulation into the resident scratch.
    acc_ref[...] += jnp.dot(img_ref[...], wimg_ref[...],
                            preferred_element_type=jnp.float32)    # (tm, E_pad)

    @pl.when(k == pl.num_programs(1) - 1)
    def _():
        emb = acc_ref[...]                                         # (tm, E_pad) f32
        inv = lax.rsqrt(jnp.sum(emb * emb, axis=-1, keepdims=True) + 1e-12)
        # Similarity without materializing a transpose: contract dim 1 with dim 1.
        raw = lax.dot_general(
            emb.astype(jnp.bfloat16), txtn_ref[...],
            (((1,), (1,)), ((), ())),
            preferred_element_type=jnp.float32)                    # (tm, n_pad)
        # Fold the image L2 scale into the small output tile (text side already unit).
        out_ref[...] = raw * inv


# ----------------------------------------------------------------------------------
# Wrapper
# ----------------------------------------------------------------------------------
def _round_up(x, m):
    return ((x + m - 1) // m) * m


def score_forward(images_nchw, text_feats, w_img, w_txt, *, tm=256, tk=512):
    """Return the (m, n) image-text score matrix (Score.forward semantics)."""
    m = images_nchw.shape[0]
    n = text_feats.shape[0]
    d_img = math.prod(images_nchw.shape[1:])
    d_txt = text_feats.shape[1]
    e = w_img.shape[1]
    assert w_txt.shape == (d_txt, e)

    # Padded / tiled sizes: lane-dense output (n -> x128), E -> x128, m -> sublane tile.
    n_pad = _round_up(n, 128)
    e_pad = _round_up(e, 128)
    tm_eff = min(tm, _round_up(m, 16))
    m_pad = _round_up(m, tm_eff)
    tk_eff = min(tk, _round_up(d_img, 128))
    k_pad = _round_up(d_img, tk_eff)

    # Glue: flatten NCHW row-major (torch .reshape(m, -1)), cast to bf16, zero-pad.
    img_flat = images_nchw.reshape(m, -1).astype(jnp.bfloat16)
    img_flat = jnp.pad(img_flat, ((0, m_pad - m), (0, k_pad - d_img)))
    w_img_p = jnp.pad(w_img.astype(jnp.bfloat16),
                      ((0, k_pad - d_img), (0, e_pad - e)))
    txt_p = jnp.pad(text_feats.astype(jnp.bfloat16), ((0, n_pad - n), (0, 0)))
    w_txt_p = jnp.pad(w_txt.astype(jnp.bfloat16), ((0, 0), (0, e_pad - e)))

    # --- text side: computed once, outside the m/K loop -----------------------------
    txt_n = pl.pallas_call(
        _text_embed_kernel,
        out_shape=jax.ShapeDtypeStruct((n_pad, e_pad), jnp.bfloat16),
        in_specs=[pl.BlockSpec(memory_space=pltpu.VMEM),
                  pl.BlockSpec(memory_space=pltpu.VMEM)],
        out_specs=pl.BlockSpec(memory_space=pltpu.VMEM),
    )(txt_p, w_txt_p)

    # --- image side: tiled over (m, K) with a resident accumulator ------------------
    grid = (m_pad // tm_eff, k_pad // tk_eff)
    out = pl.pallas_call(
        _img_score_kernel,
        out_shape=jax.ShapeDtypeStruct((m_pad, n_pad), jnp.float32),
        grid_spec=pltpu.PrefetchScalarGridSpec(
            num_scalar_prefetch=0,
            grid=grid,
            in_specs=[
                # image tile (tm, tk): new block every (i, k)
                pl.BlockSpec((tm_eff, tk_eff), lambda i, k: (i, k)),
                # W_img tile (tk, E_pad): advances with K only
                pl.BlockSpec((tk_eff, e_pad), lambda i, k: (k, 0)),
                # normalized text embeddings: same block every step (stays resident)
                pl.BlockSpec((n_pad, e_pad), lambda i, k: (0, 0)),
            ],
            out_specs=pl.BlockSpec((tm_eff, n_pad), lambda i, k: (i, 0)),
            scratch_shapes=[pltpu.VMEM((tm_eff, e_pad), jnp.float32)],
        ),
        compiler_params=pltpu.CompilerParams(
            dimension_semantics=("parallel", "arbitrary"),
            vmem_limit_bytes=32 * 1024 * 1024,
        ),
    )(img_flat, w_img_p, txt_n)

    return out[:m, :n]


# ----------------------------------------------------------------------------------
# Pure-JAX reference (mirrors the kernel's bf16-input / f32-accumulate arithmetic)
# ----------------------------------------------------------------------------------
def _reference(images_nchw, text_feats, w_img, w_txt):
    m = images_nchw.shape[0]
    img = images_nchw.reshape(m, -1).astype(jnp.bfloat16)
    img_emb = jnp.dot(img, w_img.astype(jnp.bfloat16),
                      preferred_element_type=jnp.float32)
    txt_emb = jnp.dot(text_feats.astype(jnp.bfloat16), w_txt.astype(jnp.bfloat16),
                      preferred_element_type=jnp.float32)
    txt_n = (txt_emb * lax.rsqrt(jnp.sum(txt_emb ** 2, -1, keepdims=True) + 1e-12)
             ).astype(jnp.bfloat16)
    img_inv = lax.rsqrt(jnp.sum(img_emb ** 2, -1, keepdims=True) + 1e-12)
    raw = lax.dot_general(img_emb.astype(jnp.bfloat16), txt_n,
                          (((1,), (1,)), ((), ())),
                          preferred_element_type=jnp.float32)
    return raw * img_inv


if __name__ == "__main__":
    # Small synthetic shapes: m=2 images (NCHW 2,4,16,16 -> D_IMG=1024 so the K axis
    # actually tiles), n=3 texts with 32-dim features, embedding dim E=32.
    M, C, H, W = 2, 4, 16, 16
    N, D_TXT = 3, 32
    E = 32
    D_IMG = C * H * W

    key = jax.random.PRNGKey(0)
    k_img, k_txt, k_wi, k_wt = jax.random.split(key, 4)

    images = jax.random.normal(k_img, (M, C, H, W), dtype=jnp.float32)
    texts = jax.random.normal(k_txt, (N, D_TXT), dtype=jnp.float32)
    # Deterministic synthetic "score model" parameters (no checkpoint loading).
    w_img = jax.random.normal(k_wi, (D_IMG, E), dtype=jnp.float32) * (1.0 / jnp.sqrt(D_IMG))
    w_txt = jax.random.normal(k_wt, (D_TXT, E), dtype=jnp.float32) * (1.0 / jnp.sqrt(D_TXT))

    scores = score_forward(images, texts, w_img, w_txt)
    jax.block_until_ready(scores)

    ref = _reference(images, texts, w_img, w_txt)
    assert scores.shape == (M, N), scores.shape
    assert jnp.allclose(scores, ref, atol=2e-2, rtol=2e-2), (scores, ref)

    # TODO(synk): video frame extraction / cv2 image concatenation / file I/O and the
    # `generate=True` branch of Score.forward have no Pallas equivalent (host-side ops).
    print("KERNEL_OK")
</pallas_src>

<mosaic_0001>
module attributes {stable_mosaic.version = 11 : i64} {
  func.func @_text_embed_kernel(%arg0: memref<128x32xbf16, #tpu.memory_space<vmem>>, %arg1: memref<32x128xbf16, #tpu.memory_space<vmem>>, %arg2: memref<128x128xbf16, #tpu.memory_space<vmem>>) attributes {dimension_semantics = [], scalar_prefetch = 0 : i64, scratch_operands = 0 : i64, tpu.core_type = #tpu.core_type<tc>} {
    %c0 = arith.constant 0 : index
    %c0_0 = arith.constant 0 : index
    %0 = vector.load %arg0[%c0, %c0_0] : memref<128x32xbf16, #tpu.memory_space<vmem>>, vector<128x32xbf16>
    %c0_1 = arith.constant 0 : index
    %c0_2 = arith.constant 0 : index
    %1 = vector.load %arg1[%c0_1, %c0_2] : memref<32x128xbf16, #tpu.memory_space<vmem>>, vector<32x128xbf16>
    %cst = arith.constant dense<0.000000e+00> : vector<128x128xf32>
    %2 = tpu.matmul %0, %1, %cst {dimension_numbers = #tpu.dot_dimension_numbers<[1], [0], [0], [1], [0, 0, 1, 1], [], []>} : vector<128x32xbf16>, vector<32x128xbf16>, vector<128x128xf32> -> vector<128x128xf32>
    %3 = arith.mulf %2, %2 : vector<128x128xf32>
    %cst_3 = arith.constant dense<0.000000e+00> : vector<128xf32>
    %4 = vector.multi_reduction <add>, %3, %cst_3 [1] : vector<128x128xf32> to vector<128xf32>
    %5 = vector.shape_cast %4 : vector<128xf32> to vector<128x1xf32>
    %cst_4 = arith.constant 9.99999996E-13 : f32
    %6 = vector.broadcast %cst_4 : f32 to vector<128x1xf32>
    %7 = arith.addf %5, %6 : vector<128x1xf32>
    %8 = math.rsqrt %7 : vector<128x1xf32>
    %9 = vector.broadcast %8 : vector<128x1xf32> to vector<128x128xf32>
    %10 = arith.mulf %2, %9 : vector<128x128xf32>
    %11 = arith.truncf %10 : vector<128x128xf32> to vector<128x128xbf16>
    %c0_5 = arith.constant 0 : index
    %c0_6 = arith.constant 0 : index
    %12 = vector.load %arg2[%c0_5, %c0_6] : memref<128x128xbf16, #tpu.memory_space<vmem>>, vector<128x128xbf16>
    tpu.vector_store %arg2[%c0_5, %c0_6], %11 {strides = array<i32>} : memref<128x128xbf16, #tpu.memory_space<vmem>>, vector<128x128xbf16>,
    return
  }
}

</mosaic_0001>

<bundles_post_ra>
// kernel: tpu_custom_call.1
= control target key start
LH: loop header
LB: loop body
LE: loop exit
PB: predicated region body
PF: predicated region fallthrough
CT: control target
= control target key end

     0   :  { %vm85_vm0 = vcmask 261120   ;;  %s747_s0 = inlined_call_operand.vmem [shape: bf16[128,32], index: 0, kind: input, shape index: {}]   ;;  %s748_s1 = inlined_call_operand.vmem [shape: bf16[32,128], index: 1, kind: input, shape index: {}]   ;;  %s749_s2 = inlined_call_operand.hbm [shape: bf16[128,128], index: 2, kind: output, shape index: {}]  }
   0x1   :  { %v533_v0 = vld [vmem:[%s748_s1] sm:$0xff]   ;;  %v534_v1 = vld [vmem:[%s748_s1 + $0x8] sm:$0xff]   ;;  %v539_v6 = vld [vmem:[%s747_s0 + $0x10] sm:$0xff]  }
   0x2   :  { %506 = vmatprep.subr.bf16.mxu0 %v533_v0  ;;  %526 = vmatprep.subr.bf16.mxu1 %v533_v0  ;;  %v535_v2 = vld [vmem:[%s747_s0] sm:$0xff]   ;;  %v537_v4 = vld [vmem:[%s747_s0 + $0x8] sm:$0xff]   ;;  %v541_v7 = vld [vmem:[%s747_s0 + $0x30] sm:$0xff]  }
   0x3   :  { %507 = vmatpush3.bf16.msra.mxu0 %v533_v0  ;;  %528 = vmatpush3.bf16.msra.mxu1 %v533_v0  ;;  %v536_v3 = vld [vmem:[%s747_s0 + $0x20] sm:$0xff]   ;;  %v538_v5 = vld [vmem:[%s747_s0 + $0x28] sm:$0xff]  }
   0x4   :  { %508 = vmatprep.subr.bf16.mxu0 %v534_v1  ;;  %527 = vmatprep.subr.bf16.mxu1 %v534_v1 }
   0x5   :  { %510 = vmatprep.mubr.msk.bf16.mxu0 %vm85_vm0, %v535_v2  ;;  %518 = vmatprep.mubr.msk.bf16.mxu1 %vm85_vm0, %v536_v3 }
   0x7   :  { %509 = vmatpush3.bf16.msra.mxu0 %v534_v1  ;;  %529 = vmatpush3.bf16.msra.mxu1 %v534_v1 }
   0xa   :  { %511 = vmatmul.mubr.msk.bf16.vlgmr.msra.gmra.mrb[0].mxu0 %vm85_vm0, %v537_v4  ;;  %519 = vmatmul.mubr.msk.bf16.vlgmr.msra.gmra.mrb[0].mxu1 %vm85_vm0, %v538_v5 }
   0xb   :  { %7 = vsyncpa [#allocation3], 0  ;;  %514 = vmatprep.mubr.msk.bf16.mxu0 %vm85_vm0, %v539_v6  ;;  %522 = vmatprep.mubr.msk.bf16.mxu1 %vm85_vm0, %v541_v7  ;;  %v540_v8 = vld [vmem:[%s747_s0 + $0x18] sm:$0xff]  }
   0xc   :  { %v542_v9 = vld [vmem:[%s747_s0 + $0x38] sm:$0xff]   ;;  %s599_s0 = smov [#allocation2]  }
   0xd   :  { %s388_s28 = sshll.u32 %s599_s0, 4  ;;  %s389_s28 = int_to_ptr.vmem [resolvable:$true] %s388_s28 }
   0xe   :  { %s575_s29 = scalar_lea.vmem %s389_s28, 1024  ;;  %p580_p1 = scmp.lt.s32.totalorder %s389_s28, %s389_s28 }
   0xf   :  { %p576_p0 = scmp.ne.s32.totalorder %s389_s28, %s575_s29  ;;  %p581_p2 = scmp.lt.s32.totalorder %s575_s29, %s575_s29 }
  0x11   :  { %p582_p3 = por %p581_p2, %p580_p1 }
  0x12   :  { %515 = vmatmul.mubr.msk.bf16.gmra.mrb[4].mxu0 %vm85_vm0, %v540_v8  ;;  %523 = vmatmul.mubr.msk.bf16.gmra.mrb[4].mxu1 %vm85_vm0, %v542_v9 }
  0x13   :  { %p583_p4 = pnand %p582_p3, %p576_p0 }
  0xdd   :  { %v655_v10 = vpop.f32.mrb[0].mxu0  ;;  %v657_v11 = vpop.f32.mrb[0].mxu1 }
  0xde   :  { %v659_v12 = vpop.f32.mrb[1].mxu0  ;;  %v661_v13 = vpop.f32.mrb[1].mxu1  ;;  %v217_v14 = vmul.f32 %v657_v11, %v657_v11  ;;  %v209_v15 = vmul.f32 %v655_v10, %v655_v10 }
  0xdf   :  { %v667_v16 = vpop.f32.mrb[2].mxu0  ;;  %v669_v17 = vpop.f32.mrb[2].mxu1  ;;  %v207_v20 = vmul.f32 %v659_v12, %v659_v12  ;;  %v215_v24 = vmul.f32 %v661_v13, %v661_v13 }
  0xe0   :  { %243 = vadd.xlane.f32.xlu0 %v217_v14  ;;  %v671_v18 = vpop.f32.mrb[3].mxu1  ;;  %227 = vadd.xlane.f32.xlu1 %v209_v15  ;;  %v673_v19 = vpop.f32.mrb[3].mxu0  ;;  %v210_v21 = vmul.f32 %v667_v16, %v667_v16  ;;  %v218_v25 = vmul.f32 %v669_v17, %v669_v17 }
  0xe1   :  { %v216_v32 = vmul.f32 %v671_v18, %v671_v18  ;;  %v208_v33 = vmul.f32 %v673_v19, %v673_v19 }
  0xe4   :  { %223 = vadd.xlane.f32.xlu0 %v207_v20  ;;  %229 = vadd.xlane.f32.xlu1 %v210_v21 }
  0xe5   :  { %v679_v22 = vpop.f32.mrb[4].mxu0  ;;  %v681_v23 = vpop.f32.mrb[4].mxu1 }
  0xe6   :  { %v687_v26 = vpop.f32.mrb[5].mxu0  ;;  %v689_v27 = vpop.f32.mrb[5].mxu1  ;;  %v213_v34 = vmul.f32 %v679_v22, %v679_v22  ;;  %v221_v40 = vmul.f32 %v681_v23, %v681_v23 }
  0xe7   :  { %v691_v28 = vpop.f32.mrb[6].mxu0  ;;  %v693_v29 = vpop.f32.mrb[6].mxu1  ;;  %v211_v37 = vmul.f32 %v687_v26, %v687_v26  ;;  %v219_v39 = vmul.f32 %v689_v27, %v689_v27 }
  0xe8   :  { %239 = vadd.xlane.f32.xlu0 %v215_v24  ;;  %245 = vadd.xlane.f32.xlu1 %v218_v25  ;;  %v695_v30 = vpop.f32.mrb[7].mxu0  ;;  %v697_v31 = vpop.f32.mrb[7].mxu1  ;;  %v214_v35 = vmul.f32 %v691_v28, %v691_v28  ;;  %v222_v41 = vmul.f32 %v693_v29, %v693_v29 }
  0xe9   :  { %v212_v36 = vmul.f32 %v695_v30, %v695_v30  ;;  %v220_v38 = vmul.f32 %v697_v31, %v697_v31 }
  0xec   :  { %241 = vadd.xlane.f32.xlu1 %v216_v32  ;;  %225 = vadd.xlane.f32.xlu0 %v208_v33 }
  0xf0   :  { %235 = vadd.xlane.f32.xlu0 %v213_v34  ;;  %237 = vadd.xlane.f32.xlu1 %v214_v35 }
  0xf4   :  { %231 = vadd.xlane.f32.xlu0 %v211_v37  ;;  %233 = vadd.xlane.f32.xlu1 %v212_v36 }
  0xf8   :  { %247 = vadd.xlane.f32.xlu0 %v219_v39  ;;  %249 = vadd.xlane.f32.xlu1 %v220_v38 }
  0xfc   :  { %251 = vadd.xlane.f32.xlu0 %v221_v40  ;;  %253 = vadd.xlane.f32.xlu1 %v222_v41 }
 0x16d   :  { %v244_v42 = vpop.xlane.xlu0 %243  ;;  %v228_v43 = vpop.xlane.xlu1 %227 }
 0x16e   :  { %v257_v44 = vadd.f32 1e-12, %v228_v43  ;;  %v265_v48 = vadd.f32 1e-12, %v244_v42 }
 0x170   :  { %543 = vrsqrt.f32 %v257_v44 }
 0x171   :  { %v224_v45 = vpop.xlane.xlu0 %223  ;;  %v230_v46 = vpop.xlane.xlu1 %229 }
 0x172   :  { %v258_v47 = vadd.f32 1e-12, %v230_v46  ;;  %v255_v53 = vadd.f32 1e-12, %v224_v45 }
 0x174   :  { %545 = vrsqrt.f32 %v258_v47 }
 0x175   :  { %v240_v49 = vpop.xlane.xlu0 %239  ;;  %v246_v50 = vpop.xlane.xlu1 %245  ;;  %547 = vrsqrt.f32 %v265_v48 }
 0x176   :  { %v263_v51 = vadd.f32 1e-12, %v240_v49  ;;  %v266_v52 = vadd.f32 1e-12, %v246_v50 }
 0x178   :  { %549 = vrsqrt.f32 %v266_v52 }
 0x179   :  { %v242_v54 = vpop.xlane.xlu1 %241  ;;  %v226_v55 = vpop.xlane.xlu0 %225  ;;  %551 = vrsqrt.f32 %v263_v51 }
 0x17a   :  { %v264_v56 = vadd.f32 1e-12, %v242_v54  ;;  %v256_v57 = vadd.f32 1e-12, %v226_v55  ;;  %553 = vrsqrt.f32 %v255_v53  ;;  %v544_v58 = vpop.eup %543 }
 0x17b   :  { %v289_v0 = vmul.f32 %v544_v58, %v655_v10 }
 0x17c   :  { %555 = vrsqrt.f32 %v264_v56 }
 0x17d   :  { %557 = vrsqrt.f32 %v256_v57  ;;  %v236_v59 = vpop.xlane.xlu0 %235  ;;  %v238_v60 = vpop.xlane.xlu1 %237 }
 0x17e   :  { %v261_v61 = vadd.f32 1e-12, %v236_v59  ;;  %v262_v62 = vadd.f32 1e-12, %v238_v60  ;;  %v546_v63 = vpop.eup %545 }
 0x17f   :  { %v290_v1 = vmul.f32 %v546_v63, %v667_v16  ;;  %v548_v2 = vpop.eup %547 }
 0x180   :  { %559 = vrsqrt.f32 %v261_v61  ;;  %v297_v14 = vmul.f32 %v548_v2, %v657_v11 }
 0x181   :  { %561 = vrsqrt.f32 %v262_v62  ;;  %v232_v3 = vpop.xlane.xlu0 %231  ;;  %v234_v4 = vpop.xlane.xlu1 %233  ;;  %v457_v5 = vpack.c.bf16 %v290_v1, %v289_v0 }
 0x182   :  { %v259_v6 = vadd.f32 1e-12, %v232_v3  ;;  %v260_v7 = vadd.f32 1e-12, %v234_v4  ;;  %v550_v8 = vpop.eup %549 }
 0x183   :  { %v552_v9 = vpop.eup %551  ;;  %489 = vst [vmem:[#allocation2 + $0x8] sm:$0xff] %v457_v5   ;;  %v298_v15 = vmul.f32 %v550_v8, %v669_v17 }
 0x184   :  { %563 = vrsqrt.f32 %v259_v6  ;;  %v554_v20 = vpop.eup %553  ;;  %v295_v34 = vmul.f32 %v552_v9, %v661_v13 }
 0x185   :  { %565 = vrsqrt.f32 %v260_v7  ;;  %v248_v10 = vpop.xlane.xlu0 %247  ;;  %v250_v16 = vpop.xlane.xlu1 %249  ;;  %v477_v24 = vpack.c.bf16 %v298_v15, %v297_v14  ;;  %v287_v36 = vmul.f32 %v554_v20, %v659_v12 }
 0x186   :  { %v556_v21 = vpop.eup %555  ;;  %v267_v25 = vadd.f32 1e-12, %v248_v10  ;;  %v268_v32 = vadd.f32 1e-12, %v250_v16 }
 0x187   :  { %v558_v33 = vpop.eup %557  ;;  %v296_v35 = vmul.f32 %v556_v21, %v671_v18  ;;  %493 = vst [vmem:[#allocation2 + $0x28] sm:$0xff] %v477_v24  }
 0x188   :  { %v288_v11 = vmul.f32 %v558_v33, %v673_v19  ;;  %567 = vrsqrt.f32 %v267_v25 }
 0x189   :  { %v472_v17 = vpack.c.bf16 %v296_v35, %v295_v34  ;;  %569 = vrsqrt.f32 %v268_v32  ;;  %v252_v37 = vpop.xlane.xlu0 %251  ;;  %v254_v38 = vpop.xlane.xlu1 %253 }
 0x18a   :  { %v560_v39 = vpop.eup %559  ;;  %v452_v40 = vpack.c.bf16 %v288_v11, %v287_v36  ;;  %v269_v41 = vadd.f32 1e-12, %v252_v37  ;;  %v270_v42 = vadd.f32 1e-12, %v254_v38 }
 0x18b   :  { %v562_v43 = vpop.eup %561  ;;  %492 = vst [vmem:[#allocation2 + $0x20] sm:$0xff] %v472_v17   ;;  %v293_v13 = vmul.f32 %v560_v39, %v679_v22 }
 0x18c   :  { %453 = vst [vmem:[#allocation2] sm:$0xff] %v452_v40   ;;  %v294_v18 = vmul.f32 %v562_v43, %v691_v28  ;;  %571 = vrsqrt.f32 %v269_v41 }
 0x18d   :  { %573 = vrsqrt.f32 %v270_v42 }
 0x18e   :  { %v564_v12 = vpop.eup %563  ;;  %v467_v19 = vpack.c.bf16 %v294_v18, %v293_v13 }
 0x18f   :  { %v566_v44 = vpop.eup %565  ;;  %v291_v45 = vmul.f32 %v564_v12, %v687_v26 }
 0x190   :  { %491 = vst [vmem:[#allocation2 + $0x18] sm:$0xff] %v467_v19   ;;  %v292_v46 = vmul.f32 %v566_v44, %v695_v30 }
 0x192   :  { %v568_v47 = vpop.eup %567  ;;  %v462_v48 = vpack.c.bf16 %v292_v46, %v291_v45 }
 0x193   :  { %v570_v49 = vpop.eup %569  ;;  %v299_v50 = vmul.f32 %v568_v47, %v689_v27 }
 0x194   :  { %490 = vst [vmem:[#allocation2 + $0x10] sm:$0xff] %v462_v48   ;;  %v300_v22 = vmul.f32 %v570_v49, %v697_v31 }
 0x196   :  { %v572_v51 = vpop.eup %571  ;;  %v482_v28 = vpack.c.bf16 %v300_v22, %v299_v50 }
 0x197   :  { %v574_v52 = vpop.eup %573  ;;  %v301_v53 = vmul.f32 %v572_v51, %v681_v23 }
 0x198   :  { %494 = vst [vmem:[#allocation2 + $0x30] sm:$0xff] %v482_v28   ;;  %v302_v26 = vmul.f32 %v574_v52, %v693_v29 }
 0x19a   :  { %v487_v30 = vpack.c.bf16 %v302_v26, %v301_v53 }
 0x19c   :  { %495 = vst [vmem:[#allocation2 + $0x38] sm:$0xff] %v487_v30  }
 0x19d   :  { %586 = shalt.err (!%p583_p4)
}
 0x19e   :  { %s587_s4 = scalar_lea.hbm %s749_s2, 1024 }
 0x19f   :  { %p588_p5 = scmp.ne.s32.totalorder %s749_s2, %s587_s4  ;;  %p591_p6 = scmp.lt.u32.totalorder %s587_s4, %s749_s2 }
 0x1a1   :  { %p593_p7 = pnand %p591_p6, %p588_p5 }
 0x1a3   :  { %596 = shalt.err (!%p593_p7)
}
 0x1a4   :  { %s600_s9 = smov 64   ;;  %s601_s10 = smov 4  }
 0x1a5   :  { %394 = dma.vmem_to_hbm [thread:$0]  %s389_s28, 1024, %s749_s2, [#allocation3], %s600_s9, %s600_s9, %s601_s10  }
 0x1a6   :  { %597 = dma.done.wait [#allocation3], 1024  }
 0x1a7   :  { %598 = vsyncadd [#allocation3], 4294966272 }
 0x1a8   :  { %398 = vsyncpa [#allocation3], 1 }

</bundles_post_ra>
